<compile_context>
chip_gen: v6e
topology: v6e:2x2x1
jax: 0.10.0
libtpu: 0.0.40
codegen_flags: <defaults>
</compile_context>

<pallas_src>
import numpy as np
import jax
import jax.numpy as jnp
from jax.experimental import pallas as pl
from jax.experimental.pallas import tpu as pltpu


def _round_up(x, m):
    return (x + m - 1) // m * m


def _pick_batch_tile(n):
    """Images per grid step: amortize the ~0.35us fixed per-step cost over
    several images while keeping >= 2 grid steps (both v7x TCs fed) and a tiny
    per-step VMEM footprint."""
    if n <= 1:
        return 1
    return max(1, min(8, n // 2))


# ------------------------------ fused kernel -------------------------------- #

def _make_fused_kernel(*, H, W, cin, cout, nb, has_proj):
    P = H * W
    ext = _round_up(2 * W + 2, 128)   # lane-aligned right zero tail of x
    moff = _round_up(2 * W + 2, 128)  # lane-aligned left zero extension of mid
    shifts1 = [i * W + j for i in range(3) for j in range(3)]              # conv1 valid
    shifts2 = [(i - 2) * W + (j - 2) for i in range(3) for j in range(3)]  # conv2 pad=2
    w_pow2 = (W & (W - 1)) == 0

    def kernel(x_ref, w1_ref, b1_ref, w2_ref, b2_ref, o_ref, xstk_ref, mstk_ref):
        # conv1-valid mask on the flattened lane grid: a 3x3 VALID window exists
        # only where row < H-2 and col < W-2.  Built in-kernel from an iota
        # (VPU) instead of streaming a (1, P) mask input.
        idx = jax.lax.broadcasted_iota(jnp.int32, (1, P), 1)
        if w_pow2:
            col = idx & (W - 1)
        else:
            col = idx - (idx // W) * W  # TODO(synk): vector int div path for non-pow2 W
        valid = (col < W - 2) & (idx < (H - 2) * W)

        w1 = w1_ref[...]                      # (cout_tot, 9*cin): conv1 taps (+ proj rows)
        b1 = b1_ref[...]                      # (cout, 1)
        w2 = w2_ref[...]                      # (cout, 9*cout)
        b2 = b2_ref[...]                      # (cout, 1)
        ztail = jnp.zeros((cin, ext), jnp.float32)
        zleft = jnp.zeros((cout, moff), jnp.float32)

        for b in range(nb):                   # static unroll: nb images per grid step
            xv = x_ref[b]                                       # (cin, P)
            xe = jnp.concatenate([xv, ztail], axis=1)           # (cin, P+ext), aligned

            # ---- conv1 (+ folded 1x1 projection): stack the 9 shifted tap
            # windows on the contraction axis, then ONE MXU matmul
            # (cout_tot, 9*cin) x (9*cin, P). ----
            for t, s in enumerate(shifts1):
                xstk_ref[t * cin:(t + 1) * cin, :] = xe[:, s:s + P]
            res = jnp.dot(w1, xstk_ref[...], preferred_element_type=jnp.float32)
            # Positions whose 3x3 window crossed a row boundary / read the zero
            # tail are garbage; mask to 0.  Those zeros double as the right /
            # bottom zero padding that conv2 (padding=2) relies on.
            mid = jnp.where(valid, jnp.maximum(res[:cout] + b1, 0.0), 0.0)

            # ---- conv2 (3x3, padding=2): left-extend mid by `moff` zero lanes
            # so negative tap shifts read zeros, then one stacked matmul.
            # NOTE (invariant): taps whose column offset goes negative wrap
            # into the previous row's last two columns; those are zero exactly
            # because the conv1-valid mask zeroes cols >= W-2 (3x3/pad=2 only).
            me = jnp.concatenate([zleft, mid], axis=1)          # (cout, moff+P)
            for t, s in enumerate(shifts2):
                mstk_ref[t * cout:(t + 1) * cout, :] = me[:, moff + s:moff + s + P]
            acc = jnp.dot(w2, mstk_ref[...], preferred_element_type=jnp.float32) + b2

            # residual: projection rows from the conv1 matmul, or identity x.
            acc = acc + (res[cout:] if has_proj else xv)
            o_ref[b] = jnp.maximum(acc, 0.0).astype(o_ref.dtype)

    return kernel


def _fused_residual_block(x_flat, w1_cat, b1_col, w2_cat, b2_col, *,
                          H, W, nb, has_proj):
    """One pallas_call for the whole residual block; nb images per grid step."""
    Np, cin, P = x_flat.shape
    cout = w2_cat.shape[0]
    assert Np % nb == 0
    kernel = _make_fused_kernel(H=H, W=W, cin=cin, cout=cout, nb=nb,
                                has_proj=has_proj)

    # NOTE: per-step VMEM here is a few hundred KiB at most.  For large
    # H*W*C, add a second grid axis tiling P (with a 2-row halo) and re-derive
    # the tile for v7x's 64 MiB VMEM (raise vmem_limit_bytes if needed).
    # TODO(synk): cast weights/activations to bf16 at the matmul (keep f32
    # accumulation + f32 elementwise) once channels/feature maps grow.
    return pl.pallas_call(
        kernel,
        out_shape=jax.ShapeDtypeStruct((Np, cout, P), jnp.float32),
        grid_spec=pltpu.PrefetchScalarGridSpec(
            num_scalar_prefetch=0,
            grid=(Np // nb,),
            in_specs=[
                pl.BlockSpec((nb, cin, P), lambda n: (n, 0, 0)),        # x
                pl.BlockSpec(w1_cat.shape, lambda n: (0, 0)),           # conv1+proj weights
                pl.BlockSpec(b1_col.shape, lambda n: (0, 0)),           # conv1 bias
                pl.BlockSpec(w2_cat.shape, lambda n: (0, 0)),           # conv2 weights
                pl.BlockSpec(b2_col.shape, lambda n: (0, 0)),           # conv2 bias
            ],
            out_specs=pl.BlockSpec((nb, cout, P), lambda n: (n, 0, 0)),
            scratch_shapes=[
                pltpu.VMEM((9 * cin, P), jnp.float32),    # stacked conv1 windows
                pltpu.VMEM((9 * cout, P), jnp.float32),   # stacked conv2 windows
            ],
        ),
        compiler_params=pltpu.CompilerParams(
            dimension_semantics=("parallel",)),   # batch shards across TCs (v7x)
    )(x_flat, w1_cat, b1_col, w2_cat, b2_col)


# ------------------------------- Module wrapper ----------------------------- #

class ResidualConvPallas:
    """Pallas TPU implementation of ResidualConv (inference forward)."""

    def __init__(self, in_channels, out_channels, kernel_size=(3, 3),
                 padding=1, activation=None, key=None):
        # `padding` / `activation` kept for interface parity; the original
        # module ignores `padding` for conv1 and hard-uses ReLU.
        assert tuple(kernel_size) == (3, 3), "fused kernel is specialized to 3x3"
        self.in_channels = in_channels
        self.out_channels = out_channels
        self.kernel_size = tuple(kernel_size)
        kh, kw = self.kernel_size
        key = jax.random.PRNGKey(0) if key is None else key
        k1, k2, k3, k4, k5 = jax.random.split(key, 5)

        # Deterministic PyTorch-default-style (uniform +-1/sqrt(fan_in)) init.
        fan1 = in_channels * kh * kw
        a1 = 1.0 / float(np.sqrt(fan1))
        self.w1 = jax.random.uniform(k1, (out_channels, in_channels, kh, kw),
                                     jnp.float32, -a1, a1)
        self.b1 = jax.random.uniform(k2, (out_channels,), jnp.float32, -a1, a1)

        fan2 = out_channels * kh * kw
        a2 = 1.0 / float(np.sqrt(fan2))
        self.w2 = jax.random.uniform(k3, (out_channels, out_channels, kh, kw),
                                     jnp.float32, -a2, a2)
        self.b2 = jax.random.uniform(k4, (out_channels,), jnp.float32, -a2, a2)

        if in_channels != out_channels:
            ap = 1.0 / float(np.sqrt(in_channels))
            self.wp = jax.random.uniform(k5, (out_channels, in_channels, 1, 1),
                                         jnp.float32, -ap, ap)
        else:
            self.wp = None

        # GEMM-layout parameters prepared once (perf feedback): the 9 taps are
        # concatenated along the contraction axis (tap-major, channel within),
        # and the 1x1 projection is folded in as `out_channels` extra rows
        # whose only nonzero block is the tap-(0,0) columns.
        w1_cat = jnp.transpose(self.w1, (0, 2, 3, 1)).reshape(
            out_channels, kh * kw * in_channels)
        if self.wp is not None:
            wp_mat = self.wp.reshape(out_channels, in_channels)
            proj_rows = jnp.concatenate(
                [wp_mat,
                 jnp.zeros((out_channels, (kh * kw - 1) * in_channels),
                           jnp.float32)], axis=1)
            w1_cat = jnp.concatenate([w1_cat, proj_rows], axis=0)
        self.w1_cat = w1_cat                                  # (cout or 2*cout, 9*cin)
        self.b1_col = self.b1.reshape(out_channels, 1)
        self.w2_cat = jnp.transpose(self.w2, (0, 2, 3, 1)).reshape(
            out_channels, kh * kw * out_channels)             # (cout, 9*cout)
        self.b2_col = self.b2.reshape(out_channels, 1)

    def __call__(self, x_nchw):
        N, Cin, H, W = x_nchw.shape
        assert Cin == self.in_channels
        assert H >= 3 and W >= 3, "fused 3x3 kernel assumes H >= 3 and W >= 3"
        P = H * W
        # NCHW is already channels-first: flatten spatial onto the lane axis.
        # No host-side zero padding of x (the tail extension happens in-kernel).
        x_flat = x_nchw.astype(jnp.float32).reshape(N, Cin, P)
        nb = _pick_batch_tile(N)
        Np = _round_up(N, nb)
        if Np != N:
            x_flat = jnp.pad(x_flat, ((0, Np - N), (0, 0), (0, 0)))
        out_flat = _fused_residual_block(
            x_flat, self.w1_cat, self.b1_col, self.w2_cat, self.b2_col,
            H=H, W=W, nb=nb, has_proj=self.wp is not None)
        if Np != N:
            out_flat = out_flat[:N]
        return out_flat.reshape(N, self.out_channels, H, W)   # free reshape -> NCHW


# --------------------------------- Reference -------------------------------- #

def _reference(model, x_nchw):
    dn = ("NHWC", "HWIO", "NHWC")
    x = jnp.transpose(x_nchw, (0, 2, 3, 1))
    w1 = jnp.transpose(model.w1, (2, 3, 1, 0))
    out = jax.lax.conv_general_dilated(x, w1, (1, 1), "VALID",
                                       dimension_numbers=dn) + model.b1
    out = jnp.maximum(out, 0.0)
    w2 = jnp.transpose(model.w2, (2, 3, 1, 0))
    out = jax.lax.conv_general_dilated(out, w2, (1, 1), [(2, 2), (2, 2)],
                                       dimension_numbers=dn) + model.b2
    if model.wp is None:
        res = x
    else:
        wp = jnp.transpose(model.wp, (2, 3, 1, 0))
        res = jax.lax.conv_general_dilated(x, wp, (1, 1), "VALID",
                                           dimension_numbers=dn)
    out = jnp.maximum(out + res, 0.0)
    return jnp.transpose(out, (0, 3, 1, 2))


if __name__ == "__main__":
    key = jax.random.PRNGKey(0)
    kx, kp1, kp2 = jax.random.split(key, 3)
    x = jax.random.normal(kx, (2, 4, 16, 16), jnp.float32)    # NCHW, like PyTorch

    # Projection-residual path (in_channels != out_channels).
    model = ResidualConvPallas(in_channels=4, out_channels=8, key=kp1)
    out = jax.block_until_ready(model(x))
    assert out.shape == (2, 8, 16, 16), out.shape
    ref = jax.block_until_ready(_reference(model, x))
    np.testing.assert_allclose(np.asarray(out), np.asarray(ref),
                               rtol=1e-4, atol=1e-4)

    # Identity-residual path (in_channels == out_channels): no projection rows
    # in the stacked conv1 weight matrix, residual is the raw input tile.
    model_id = ResidualConvPallas(in_channels=4, out_channels=4, key=kp2)
    out_id = jax.block_until_ready(model_id(x))
    ref_id = jax.block_until_ready(_reference(model_id, x))
    np.testing.assert_allclose(np.asarray(out_id), np.asarray(ref_id),
                               rtol=1e-4, atol=1e-4)

    print("KERNEL_OK")
</pallas_src>

<mosaic_0001>
module attributes {stable_mosaic.version = 11 : i64} {
  func.func @kernel(%arg0: i32, %arg1: memref<1x4x256xf32, #tpu.memory_space<vmem>>, %arg2: memref<16x36xf32, #tpu.memory_space<vmem>>, %arg3: memref<8x1xf32, #tpu.memory_space<vmem>>, %arg4: memref<8x72xf32, #tpu.memory_space<vmem>>, %arg5: memref<8x1xf32, #tpu.memory_space<vmem>>, %arg6: memref<1x8x256xf32, #tpu.memory_space<vmem>>, %arg7: memref<36x256xf32, #tpu.memory_space<vmem>>, %arg8: memref<72x256xf32, #tpu.memory_space<vmem>>) attributes {dimension_semantics = [#tpu.dimension_semantics<parallel>], iteration_bounds = array<i64: 2>, scalar_prefetch = 0 : i64, scratch_operands = 2 : i64, tpu.core_type = #tpu.core_type<tc>, window_params = [{transform_indices = @transform_0, window_bounds = array<i64: 1, 4, 256>}, {pipeline_mode = #tpu.pipeline_mode<synchronous>, transform_indices = @transform_1, window_bounds = array<i64: 16, 36>}, {pipeline_mode = #tpu.pipeline_mode<synchronous>, transform_indices = @transform_2, window_bounds = array<i64: 8, 1>}, {pipeline_mode = #tpu.pipeline_mode<synchronous>, transform_indices = @transform_3, window_bounds = array<i64: 8, 72>}, {pipeline_mode = #tpu.pipeline_mode<synchronous>, transform_indices = @transform_4, window_bounds = array<i64: 8, 1>}, {transform_indices = @transform_5, window_bounds = array<i64: 1, 8, 256>}]} {
    %0 = tpu.iota {dimensions = array<i32: 1>} : vector<1x256xi32>
    %c15_i32 = arith.constant 15 : i32
    %1 = vector.broadcast %c15_i32 : i32 to vector<1x256xi32>
    %2 = arith.andi %0, %1 : vector<1x256xi32>
    %c14_i32 = arith.constant 14 : i32
    %3 = vector.broadcast %c14_i32 : i32 to vector<1x256xi32>
    %4 = arith.cmpi slt, %2, %3 : vector<1x256xi32>
    %c224_i32 = arith.constant 224 : i32
    %5 = vector.broadcast %c224_i32 : i32 to vector<1x256xi32>
    %6 = arith.cmpi slt, %0, %5 : vector<1x256xi32>
    %7 = arith.andi %4, %6 : vector<1x256xi1>
    %c0 = arith.constant 0 : index
    %c0_0 = arith.constant 0 : index
    %8 = vector.load %arg2[%c0, %c0_0] : memref<16x36xf32, #tpu.memory_space<vmem>>, vector<16x36xf32>
    %c0_1 = arith.constant 0 : index
    %c0_2 = arith.constant 0 : index
    %9 = vector.load %arg3[%c0_1, %c0_2] : memref<8x1xf32, #tpu.memory_space<vmem>>, vector<8x1xf32>
    %c0_3 = arith.constant 0 : index
    %c0_4 = arith.constant 0 : index
    %10 = vector.load %arg4[%c0_3, %c0_4] : memref<8x72xf32, #tpu.memory_space<vmem>>, vector<8x72xf32>
    %c0_5 = arith.constant 0 : index
    %c0_6 = arith.constant 0 : index
    %11 = vector.load %arg5[%c0_5, %c0_6] : memref<8x1xf32, #tpu.memory_space<vmem>>, vector<8x1xf32>
    %cst = arith.constant 0.000000e+00 : f32
    %12 = vector.broadcast %cst : f32 to vector<4x128xf32>
    %cst_7 = arith.constant 0.000000e+00 : f32
    %13 = vector.broadcast %cst_7 : f32 to vector<8x128xf32>
    %c0_8 = arith.constant 0 : index
    %c0_9 = arith.constant 0 : index
    %c0_10 = arith.constant 0 : index
    %14 = vector.load %arg1[%c0_8, %c0_9, %c0_10] : memref<1x4x256xf32, #tpu.memory_space<vmem>>, vector<1x4x256xf32>
    %15 = vector.shape_cast %14 : vector<1x4x256xf32> to vector<4x256xf32>
    %16 = tpu.concatenate %15, %12 in 1 : vector<4x256xf32>, vector<4x128xf32> -> vector<4x384xf32>
    %17 = vector.extract_strided_slice %16 {offsets = [0, 0], sizes = [4, 256], strides = [1, 1]} : vector<4x384xf32> to vector<4x256xf32>
    %c0_11 = arith.constant 0 : index
    %c0_12 = arith.constant 0 : index
    %18 = vector.load %arg7[%c0_11, %c0_12] : memref<36x256xf32, #tpu.memory_space<vmem>>, vector<4x256xf32>
    tpu.vector_store %arg7[%c0_11, %c0_12], %17 {strides = array<i32>} : memref<36x256xf32, #tpu.memory_space<vmem>>, vector<4x256xf32>,
    %19 = vector.extract_strided_slice %16 {offsets = [0, 1], sizes = [4, 256], strides = [1, 1]} : vector<4x384xf32> to vector<4x256xf32>
    %c4 = arith.constant 4 : index
    %c0_13 = arith.constant 0 : index
    %20 = vector.load %arg7[%c4, %c0_13] : memref<36x256xf32, #tpu.memory_space<vmem>>, vector<4x256xf32>
    tpu.vector_store %arg7[%c4, %c0_13], %19 {strides = array<i32>} : memref<36x256xf32, #tpu.memory_space<vmem>>, vector<4x256xf32>,
    %21 = vector.extract_strided_slice %16 {offsets = [0, 2], sizes = [4, 256], strides = [1, 1]} : vector<4x384xf32> to vector<4x256xf32>
    %c8 = arith.constant 8 : index
    %c0_14 = arith.constant 0 : index
    %22 = vector.load %arg7[%c8, %c0_14] : memref<36x256xf32, #tpu.memory_space<vmem>>, vector<4x256xf32>
    tpu.vector_store %arg7[%c8, %c0_14], %21 {strides = array<i32>} : memref<36x256xf32, #tpu.memory_space<vmem>>, vector<4x256xf32>,
    %23 = vector.extract_strided_slice %16 {offsets = [0, 16], sizes = [4, 256], strides = [1, 1]} : vector<4x384xf32> to vector<4x256xf32>
    %c12 = arith.constant 12 : index
    %c0_15 = arith.constant 0 : index
    %24 = vector.load %arg7[%c12, %c0_15] : memref<36x256xf32, #tpu.memory_space<vmem>>, vector<4x256xf32>
    tpu.vector_store %arg7[%c12, %c0_15], %23 {strides = array<i32>} : memref<36x256xf32, #tpu.memory_space<vmem>>, vector<4x256xf32>,
    %25 = vector.extract_strided_slice %16 {offsets = [0, 17], sizes = [4, 256], strides = [1, 1]} : vector<4x384xf32> to vector<4x256xf32>
    %c16 = arith.constant 16 : index
    %c0_16 = arith.constant 0 : index
    %26 = vector.load %arg7[%c16, %c0_16] : memref<36x256xf32, #tpu.memory_space<vmem>>, vector<4x256xf32>
    tpu.vector_store %arg7[%c16, %c0_16], %25 {strides = array<i32>} : memref<36x256xf32, #tpu.memory_space<vmem>>, vector<4x256xf32>,
    %27 = vector.extract_strided_slice %16 {offsets = [0, 18], sizes = [4, 256], strides = [1, 1]} : vector<4x384xf32> to vector<4x256xf32>
    %c20 = arith.constant 20 : index
    %c0_17 = arith.constant 0 : index
    %28 = vector.load %arg7[%c20, %c0_17] : memref<36x256xf32, #tpu.memory_space<vmem>>, vector<4x256xf32>
    tpu.vector_store %arg7[%c20, %c0_17], %27 {strides = array<i32>} : memref<36x256xf32, #tpu.memory_space<vmem>>, vector<4x256xf32>,
    %29 = vector.extract_strided_slice %16 {offsets = [0, 32], sizes = [4, 256], strides = [1, 1]} : vector<4x384xf32> to vector<4x256xf32>
    %c24 = arith.constant 24 : index
    %c0_18 = arith.constant 0 : index
    %30 = vector.load %arg7[%c24, %c0_18] : memref<36x256xf32, #tpu.memory_space<vmem>>, vector<4x256xf32>
    tpu.vector_store %arg7[%c24, %c0_18], %29 {strides = array<i32>} : memref<36x256xf32, #tpu.memory_space<vmem>>, vector<4x256xf32>,
    %31 = vector.extract_strided_slice %16 {offsets = [0, 33], sizes = [4, 256], strides = [1, 1]} : vector<4x384xf32> to vector<4x256xf32>
    %c28 = arith.constant 28 : index
    %c0_19 = arith.constant 0 : index
    %32 = vector.load %arg7[%c28, %c0_19] : memref<36x256xf32, #tpu.memory_space<vmem>>, vector<4x256xf32>
    tpu.vector_store %arg7[%c28, %c0_19], %31 {strides = array<i32>} : memref<36x256xf32, #tpu.memory_space<vmem>>, vector<4x256xf32>,
    %33 = vector.extract_strided_slice %16 {offsets = [0, 34], sizes = [4, 256], strides = [1, 1]} : vector<4x384xf32> to vector<4x256xf32>
    %c32 = arith.constant 32 : index
    %c0_20 = arith.constant 0 : index
    %34 = vector.load %arg7[%c32, %c0_20] : memref<36x256xf32, #tpu.memory_space<vmem>>, vector<4x256xf32>
    tpu.vector_store %arg7[%c32, %c0_20], %33 {strides = array<i32>} : memref<36x256xf32, #tpu.memory_space<vmem>>, vector<4x256xf32>,
    %c0_21 = arith.constant 0 : index
    %c0_22 = arith.constant 0 : index
    %35 = vector.load %arg7[%c0_21, %c0_22] : memref<36x256xf32, #tpu.memory_space<vmem>>, vector<36x256xf32>
    %cst_23 = arith.constant dense<0.000000e+00> : vector<16x256xf32>
    %36 = tpu.matmul %8, %35, %cst_23 {dimension_numbers = #tpu.dot_dimension_numbers<[1], [0], [0], [1], [0, 0, 1, 1], [], []>} : vector<16x36xf32>, vector<36x256xf32>, vector<16x256xf32> -> vector<16x256xf32>
    %37 = vector.extract_strided_slice %36 {offsets = [0, 0], sizes = [8, 256], strides = [1, 1]} : vector<16x256xf32> to vector<8x256xf32>
    %38 = vector.broadcast %9 : vector<8x1xf32> to vector<8x256xf32>
    %39 = arith.addf %37, %38 : vector<8x256xf32>
    %cst_24 = arith.constant 0.000000e+00 : f32
    %40 = vector.broadcast %cst_24 : f32 to vector<8x256xf32>
    %41 = arith.maximumf %39, %40 : vector<8x256xf32>
    %cst_25 = arith.constant 0.000000e+00 : f32
    %42 = vector.shape_cast %7 : vector<1x256xi1> to vector<1x256xi1>
    %43 = vector.broadcast %42 : vector<1x256xi1> to vector<8x256xi1>
    %44 = vector.broadcast %cst_25 : f32 to vector<8x256xf32>
    %45 = arith.select %43, %41, %44 : vector<8x256xi1>, vector<8x256xf32>
    %46 = tpu.concatenate %13, %45 in 1 : vector<8x128xf32>, vector<8x256xf32> -> vector<8x384xf32>
    %47 = vector.extract_strided_slice %46 {offsets = [0, 94], sizes = [8, 256], strides = [1, 1]} : vector<8x384xf32> to vector<8x256xf32>
    %c0_26 = arith.constant 0 : index
    %c0_27 = arith.constant 0 : index
    %48 = vector.load %arg8[%c0_26, %c0_27] : memref<72x256xf32, #tpu.memory_space<vmem>>, vector<8x256xf32>
    tpu.vector_store %arg8[%c0_26, %c0_27], %47 {strides = array<i32>} : memref<72x256xf32, #tpu.memory_space<vmem>>, vector<8x256xf32>,
    %49 = vector.extract_strided_slice %46 {offsets = [0, 95], sizes = [8, 256], strides = [1, 1]} : vector<8x384xf32> to vector<8x256xf32>
    %c8_28 = arith.constant 8 : index
    %c0_29 = arith.constant 0 : index
    %50 = vector.load %arg8[%c8_28, %c0_29] : memref<72x256xf32, #tpu.memory_space<vmem>>, vector<8x256xf32>
    tpu.vector_store %arg8[%c8_28, %c0_29], %49 {strides = array<i32>} : memref<72x256xf32, #tpu.memory_space<vmem>>, vector<8x256xf32>,
    %51 = vector.extract_strided_slice %46 {offsets = [0, 96], sizes = [8, 256], strides = [1, 1]} : vector<8x384xf32> to vector<8x256xf32>
    %c16_30 = arith.constant 16 : index
    %c0_31 = arith.constant 0 : index
    %52 = vector.load %arg8[%c16_30, %c0_31] : memref<72x256xf32, #tpu.memory_space<vmem>>, vector<8x256xf32>
    tpu.vector_store %arg8[%c16_30, %c0_31], %51 {strides = array<i32>} : memref<72x256xf32, #tpu.memory_space<vmem>>, vector<8x256xf32>,
    %53 = vector.extract_strided_slice %46 {offsets = [0, 110], sizes = [8, 256], strides = [1, 1]} : vector<8x384xf32> to vector<8x256xf32>
    %c24_32 = arith.constant 24 : index
    %c0_33 = arith.constant 0 : index
    %54 = vector.load %arg8[%c24_32, %c0_33] : memref<72x256xf32, #tpu.memory_space<vmem>>, vector<8x256xf32>
    tpu.vector_store %arg8[%c24_32, %c0_33], %53 {strides = array<i32>} : memref<72x256xf32, #tpu.memory_space<vmem>>, vector<8x256xf32>,
    %55 = vector.extract_strided_slice %46 {offsets = [0, 111], sizes = [8, 256], strides = [1, 1]} : vector<8x384xf32> to vector<8x256xf32>
    %c32_34 = arith.constant 32 : index
    %c0_35 = arith.constant 0 : index
    %56 = vector.load %arg8[%c32_34, %c0_35] : memref<72x256xf32, #tpu.memory_space<vmem>>, vector<8x256xf32>
    tpu.vector_store %arg8[%c32_34, %c0_35], %55 {strides = array<i32>} : memref<72x256xf32, #tpu.memory_space<vmem>>, vector<8x256xf32>,
    %57 = vector.extract_strided_slice %46 {offsets = [0, 112], sizes = [8, 256], strides = [1, 1]} : vector<8x384xf32> to vector<8x256xf32>
    %c40 = arith.constant 40 : index
    %c0_36 = arith.constant 0 : index
    %58 = vector.load %arg8[%c40, %c0_36] : memref<72x256xf32, #tpu.memory_space<vmem>>, vector<8x256xf32>
    tpu.vector_store %arg8[%c40, %c0_36], %57 {strides = array<i32>} : memref<72x256xf32, #tpu.memory_space<vmem>>, vector<8x256xf32>,
    %59 = vector.extract_strided_slice %46 {offsets = [0, 126], sizes = [8, 256], strides = [1, 1]} : vector<8x384xf32> to vector<8x256xf32>
    %c48 = arith.constant 48 : index
    %c0_37 = arith.constant 0 : index
    %60 = vector.load %arg8[%c48, %c0_37] : memref<72x256xf32, #tpu.memory_space<vmem>>, vector<8x256xf32>
    tpu.vector_store %arg8[%c48, %c0_37], %59 {strides = array<i32>} : memref<72x256xf32, #tpu.memory_space<vmem>>, vector<8x256xf32>,
    %61 = vector.extract_strided_slice %46 {offsets = [0, 127], sizes = [8, 256], strides = [1, 1]} : vector<8x384xf32> to vector<8x256xf32>
    %c56 = arith.constant 56 : index
    %c0_38 = arith.constant 0 : index
    %62 = vector.load %arg8[%c56, %c0_38] : memref<72x256xf32, #tpu.memory_space<vmem>>, vector<8x256xf32>
    tpu.vector_store %arg8[%c56, %c0_38], %61 {strides = array<i32>} : memref<72x256xf32, #tpu.memory_space<vmem>>, vector<8x256xf32>,
    %63 = vector.extract_strided_slice %46 {offsets = [0, 128], sizes = [8, 256], strides = [1, 1]} : vector<8x384xf32> to vector<8x256xf32>
    %c64 = arith.constant 64 : index
    %c0_39 = arith.constant 0 : index
    %64 = vector.load %arg8[%c64, %c0_39] : memref<72x256xf32, #tpu.memory_space<vmem>>, vector<8x256xf32>
    tpu.vector_store %arg8[%c64, %c0_39], %63 {strides = array<i32>} : memref<72x256xf32, #tpu.memory_space<vmem>>, vector<8x256xf32>,
    %c0_40 = arith.constant 0 : index
    %c0_41 = arith.constant 0 : index
    %65 = vector.load %arg8[%c0_40, %c0_41] : memref<72x256xf32, #tpu.memory_space<vmem>>, vector<72x256xf32>
    %cst_42 = arith.constant dense<0.000000e+00> : vector<8x256xf32>
    %66 = tpu.matmul %10, %65, %cst_42 {dimension_numbers = #tpu.dot_dimension_numbers<[1], [0], [0], [1], [0, 0, 1, 1], [], []>} : vector<8x72xf32>, vector<72x256xf32>, vector<8x256xf32> -> vector<8x256xf32>
    %67 = vector.broadcast %11 : vector<8x1xf32> to vector<8x256xf32>
    %68 = arith.addf %66, %67 : vector<8x256xf32>
    %69 = vector.extract_strided_slice %36 {offsets = [8, 0], sizes = [8, 256], strides = [1, 1]} : vector<16x256xf32> to vector<8x256xf32>
    %70 = arith.addf %68, %69 : vector<8x256xf32>
    %cst_43 = arith.constant 0.000000e+00 : f32
    %71 = vector.broadcast %cst_43 : f32 to vector<8x256xf32>
    %72 = arith.maximumf %70, %71 : vector<8x256xf32>
    %c0_44 = arith.constant 0 : index
    %c0_45 = arith.constant 0 : index
    %c0_46 = arith.constant 0 : index
    %73 = vector.load %arg6[%c0_44, %c0_45, %c0_46] : memref<1x8x256xf32, #tpu.memory_space<vmem>>, vector<1x8x256xf32>
    %74 = vector.shape_cast %73 : vector<1x8x256xf32> to vector<8x256xf32>
    %75 = vector.shape_cast %72 : vector<8x256xf32> to vector<1x8x256xf32>
    tpu.vector_store %arg6[%c0_44, %c0_45, %c0_46], %75 {strides = array<i32>} : memref<1x8x256xf32, #tpu.memory_space<vmem>>, vector<1x8x256xf32>,
    return
  }
  func.func @transform_0(%arg0: i32) -> (i32, i32, i32) {
    %c0_i32 = arith.constant 0 : i32
    %c0_i32_0 = arith.constant 0 : i32
    %c0_i32_1 = arith.constant 0 : i32
    return %arg0, %c0_i32, %c0_i32_0 : i32, i32, i32
  }
  func.func @transform_1(%arg0: i32) -> (i32, i32) {
    %c0_i32 = arith.constant 0 : i32
    %c0_i32_0 = arith.constant 0 : i32
    %c0_i32_1 = arith.constant 0 : i32
    return %c0_i32, %c0_i32_0 : i32, i32
  }
  func.func @transform_2(%arg0: i32) -> (i32, i32) {
    %c0_i32 = arith.constant 0 : i32
    %c0_i32_0 = arith.constant 0 : i32
    %c0_i32_1 = arith.constant 0 : i32
    return %c0_i32, %c0_i32_0 : i32, i32
  }
  func.func @transform_3(%arg0: i32) -> (i32, i32) {
    %c0_i32 = arith.constant 0 : i32
    %c0_i32_0 = arith.constant 0 : i32
    %c0_i32_1 = arith.constant 0 : i32
    return %c0_i32, %c0_i32_0 : i32, i32
  }
  func.func @transform_4(%arg0: i32) -> (i32, i32) {
    %c0_i32 = arith.constant 0 : i32
    %c0_i32_0 = arith.constant 0 : i32
    %c0_i32_1 = arith.constant 0 : i32
    return %c0_i32, %c0_i32_0 : i32, i32
  }
  func.func @transform_5(%arg0: i32) -> (i32, i32, i32) {
    %c0_i32 = arith.constant 0 : i32
    %c0_i32_0 = arith.constant 0 : i32
    %c0_i32_1 = arith.constant 0 : i32
    return %arg0, %c0_i32, %c0_i32_0 : i32, i32, i32
  }
}

</mosaic_0001>

<bundles_post_ra>
// kernel: tpu_custom_call.1
= control target key start
LH: loop header
LB: loop body
LE: loop exit
PB: predicated region body
PF: predicated region fallthrough
CT: control target
= control target key end

     0   :  { %10 = vsyncpa [#allocation5], 0  ;;  %s1266_s0 = inlined_call_operand.vmem [shape: f32[2,4,256], index: 0, kind: input, shape index: {}]   ;;  %s1267_s1 = inlined_call_operand.hbm [shape: f32[16,36], index: 1, kind: input, shape index: {}]   ;;  %s1268_s2 = inlined_call_operand.vmem [shape: f32[8,1], index: 2, kind: input, shape index: {}]   ;;  %s1269_s3 = inlined_call_operand.hbm [shape: f32[8,72], index: 3, kind: input, shape index: {}]   ;;  %s1270_s4 = inlined_call_operand.vmem [shape: f32[8,1], index: 4, kind: input, shape index: {}]   ;;  %s1271_s5 = inlined_call_operand.hbm [shape: f32[2,8,256], index: 5, kind: output, shape index: {}]  }
   0x1   :  { %11 = vsyncpa [#allocation8], 0 }
   0x2   :  { %12 = vsyncpa [#allocation6], 0 }
   0x3   :  { %14 = vsyncpa [#allocation6 + $0x1], 0  ;;  %s1087_s18 = smov 0   ;;  %s1089_s19 = smov 0  }
   0x4   :  { %s1091_s20 = smov 0   ;;  %s1093_s21 = smov 0  }
   0x5 LB: > { %s1108_s22 = sadd.s32 4294967295, %s1032_s21   ;;  %s805_s23 = sadd.s32 4294967294, %s1032_s21   ;;  %s1032_s21 = sphi %s1093_s21, %s1285_s21   ;;  %s1028_s20 = sphi %s1091_s20, %s1284_s20   ;;  %s1024_s19 = sphi %s1089_s19, %s1283_s19   ;;  %s1020_s18 = sphi %s1087_s18, %s1282_s18  }
   0x6   : > { %s1112_s24 = sadd.s32 1, %s1032_s21   ;;  %s137_s25 = sadd.s32 1, %s1028_s20 }
   0x7   : > { %s134_s26 = ssub.s32 %s1032_s21, %s1112_s24  ;;  %p147_p0 = scmp.ne.s32.totalorder %s1028_s20, %s1024_s19 }
   0x8   : > { %p135_p1 = scmp.eq.s32.totalorder %s134_s26, 0  ;;  %p148_p2 = scmp.eq.s32.totalorder %s1108_s22, 1 }
   0x9   : > { %p153_p3 = scmp.ne.s32.totalorder %s1024_s19, %s1020_s18  ;;  %p154_p4 = scmp.eq.s32.totalorder %s805_s23, 1 }
   0xa   : > { %s1123_s27 = scalar_select %p135_p1, %s1028_s20, %s137_s25  }
   0xb   : > { %p1125_p5 = por %p148_p2, %p147_p0  ;;  %p1129_p6 = por %p154_p4, %p153_p3 }
   0xc   : > { %p806_p7 = scmp.ge.s32.totalorder %s1032_s21, 1  ;;  %p161_p8 = scmp.lt.s32.totalorder %s1032_s21, 3 }
   0xd   : > { %s1274_s29 = scalar_select %p1129_p6, 1, 0 }
   0xe   : > { %p1272_p9 = scmp.eq.s32.totalorder %s1108_s22, 0  ;;  %p1136_p10 = pnand %p806_p7, %p161_p8 }
   0xf   : > { %s1034_s6 = smov [#allocation4]   ;;  %s1035_s9 = smov [#allocation7]  }
  0x10   : > { %s173_s7 = sshll.u32 %s1034_s6, 4  ;;  %p840_p11 = pneg %p1136_p10  ;;  %s174_s7 = int_to_ptr.vmem [resolvable:$true] %s173_s7 }
  0x11   : > { %s190_s10 = sshll.u32 %s1035_s9, 4  ;;  %s923_s11 = scalar_lea.vmem %s174_s7, 256  ;;  %s191_s10 = int_to_ptr.vmem [resolvable:$true] %s190_s10 }
  0x12   : > { %p1144_p12 = pnand %p1272_p9, %p840_p11  ;;  %p924_p0 = scmp.ne.s32.totalorder %s174_s7, %s923_s11 }
  0x13   : > { %p931_p3 = scmp.lt.s32.totalorder %s174_s7, %s174_s7  ;;  %p932_p4 = scmp.lt.s32.totalorder %s923_s11, %s923_s11 }
  0x14   : > { %p914_p13 = pneg %p1144_p12 }
  0x15   : > { %p933_p7 = por %p932_p4, %p931_p3 }
  0x16   : > { %p926_p1 = pnand %p924_p0, %p914_p13 }
  0x18   : > { %p927_p2 = pneg %p926_p1 }
  0x1a   : > { %p934_p8 = pnand %p933_p7, %p927_p2 }
  0x1c   : > { %937 = shalt.err (!%p934_p8)
}
  0x1d   : > { %s1036_s12 = smov 128   ;;  %s1037_s13 = smov 8  }
  0x1e   : > { %843 = dma.hbm_to_vmem [thread:$0]  (!%p1144_p12), %s1267_s1, 256, %s174_s7, [#allocation5], %s1036_s12, %s1036_s12, %s1037_s13  }
  0x1f   : > { %s949_s16 = scalar_lea.vmem %s191_s10, 128  ;;  %p957_p9 = scmp.lt.s32.totalorder %s191_s10, %s191_s10 }
  0x20   : > { %p950_p11 = scmp.ne.s32.totalorder %s191_s10, %s949_s16  ;;  %p958_p6 = scmp.lt.s32.totalorder %s949_s16, %s949_s16 }
  0x22   : > { %p952_p0 = pnand %p950_p11, %p914_p13  ;;  %p959_p3 = por %p958_p6, %p957_p9 }
  0x24   : > { %p953_p1 = pneg %p952_p0 }
  0x26   : > { %p960_p2 = pnand %p959_p3, %p953_p1 }
  0x28   : > { %963 = shalt.err (!%p960_p2)
}
  0x29   : > { %846 = dma.hbm_to_vmem [thread:$0]  (!%p1144_p12), %s1269_s3, 128, %s191_s10, [#allocation8]  }
  0x2a   : > { %214 = sbr.rel (%p1136_p10) target bundleno = 792 (0x318), region = 40  ;;  %p1277_p4 = scmp.eq.s32.totalorder (!%p1136_p10), %s1108_s22, 0 }
  0x2f   : > { %1007 = dma.done.wait (%p1277_p4), [#allocation5], 256   ;;  %p1278_p13 = pmov %p1277_p4 }
  0x30   : > { %p1279_p7 = pmov %p1277_p4 }
  0x31   : > { %1009 = vsyncadd (%p1278_p13), [#allocation5], 4294967040 }
  0x32   : > { %1011 = dma.done.wait (%p1279_p7), [#allocation8], 128   ;;  %p1280_p6 = pmov %p1277_p4 }
  0x33   : > { %v1038_v0 = vmov 0.0   ;;  %s1039_s25 = smov 94   ;;  %p246_p9 = scmp.lt.s32.totalorder %s1108_s22, 1  ;;  %v264_v5 = vld [vmem:[%s1268_s2] sm:$0xff]  ;;  %v1047_v6 = vmov 0   ;;  %vm374_vm0 = vcmask 769024   ;;  %v251_v58 = vlaneseq }
  0x34   : > { %1013 = vsyncadd (%p1280_p6), [#allocation8], 4294967168  ;;  %372 = vrot.lane.b32.xlu0 %v1038_v0, %s1039_s25  ;;  %469 = vmatprep.mubr.f32.mxu0 %v1038_v0  ;;  %s1040_s30 = smov 96   ;;  %v276_v3 = vrot.slane %v1038_v0, 4  ;;  %s1041_s10 = smov 95   ;;  %vm348_vm1 = vcmask 785408  }
  0x35   : > { %696 = vmatprep.mubr.f32.mxu1 %v1038_v0  ;;  %s247_s26 = scalar_select %p246_p9, %s1108_s22, 1  ;;  %910 = vset.pattern.permute.xlu0 %v1047_v6  ;;  %vm361_vm2 = vcmask 777216   ;;  %vm398_vm3 = vcmask 1043456   ;;  %vm322_vm4 = vcmask 908288   ;;  %vm335_vm5 = vcmask 900096   ;;  %v262_v56 = vld [vmem:[#allocation4] sm:$0xff] }
  0x36   : > { %s1042_s11 = smov 111   ;;  %s1043_s12 = smov 110   ;;  %vm296_vm6 = vcmask 1031168   ;;  %vm309_vm7 = vcmask 916480   ;;  %vm283_vm8 = vcmask 1039360   ;;  %vm391_vm9 = vcmask 293888  }
  0x37   : > { %s826_s6 = sshll.u32 %s247_s26, 3  ;;  %s1044_s13 = smov 126   ;;  %v252_v59 = vand.u32 127, %v251_v58  ;;  %vm596_vm14 = vcmask 7168   ;;  %vm583_vm15 = vcmask 15360  }
  0x38   : > { %346 = vrot.lane.b32.xlu0 %v1038_v0, %s1040_s30  ;;  %s250_s9 = scalar_lea.vmem %s1266_s0, %s826_s6  ;;  %s1045_s14 = smov 112  }
  0x39   : > { %v267_v1 = vld [vmem:[%s250_s9] sm:$0xff]  ;;  %s1046_s15 = smov 127   ;;  %s1048_s23 = smov 1   ;;  %v253_v60 = vadd.s32 128, %v252_v59  ;;  %v254_v63 = vand.u32 15, %v252_v59 }
  0x3a   : > { %368 = vrot.lane.b32.xlu1 %v267_v1, %s1039_s25  ;;  %v269_v2 = vcombine.high %v267_v1, %v267_v1  ;;  %271 = vst [vmem:[#allocation2 + $0x30] sm:$0xf] %v267_v1  ;;  %v274_v4 = vrot.slane %v267_v1, 4  ;;  %s1050_s26 = smov 16   ;;  %s1052_s6 = smov 18  }
  0x3b   : > { %s1053_s7 = smov 32   ;;  %s1054_s8 = smov 33   ;;  %v255_v61 = vand.u32 15, %v253_v60  ;;  %vm259_vm11 = vcmp.lt.s32.totalorder %v253_v60, 224  ;;  %vm256_vm12 = vcmp.lt.s32.totalorder %v254_v63, 14 }
  0x3c   : > { %272 = vst [vmem:[#allocation2] sm:$0xf] %v269_v2  ;;  %370 = vrot.lane.b32.xlu0 %v269_v2, %s1039_s25  ;;  %s1049_s25 = smov 2   ;;  %s1055_s9 = smov 34  }
  0x3d   : > { %vm257_vm10 = vcmp.lt.s32.totalorder %v255_v61, 14 }
  0x3e   : > { %344 = vrot.lane.b32.xlu1 %v269_v2, %s1040_s30  ;;  %vm261_vm13 = vmand %vm257_vm10, %vm259_vm11 }
  0x40   : > { %359 = vrot.lane.b32.xlu0 %v276_v3, %s1041_s10 }
  0x42   : > { %357 = vrot.lane.b32.xlu1 %v269_v2, %s1041_s10 }
  0x44   : > { %355 = vrot.lane.b32.xlu0 %v274_v4, %s1041_s10 }
  0x46   : > { %342 = vrot.lane.b32.xlu1 %v267_v1, %s1040_s30  ;;  %s1051_s30 = smov 17  }
  0x48   : > { %320 = vrot.lane.b32.xlu0 %v1038_v0, %s1042_s11 }
  0x4a   : > { %318 = vrot.lane.b32.xlu1 %v269_v2, %s1042_s11 }
  0x4c   : > { %333 = vrot.lane.b32.xlu0 %v276_v3, %s1043_s12 }
  0x4e   : > { %331 = vrot.lane.b32.xlu1 %v269_v2, %s1043_s12 }
  0x50   : > { %329 = vrot.lane.b32.xlu0 %v274_v4, %s1043_s12  ;;  %s243_s12 = sand.u32 1, %s1024_s19  }
  0x52   : > { %316 = vrot.lane.b32.xlu1 %v267_v1, %s1042_s11 }
  0x54   : > { %294 = vrot.lane.b32.xlu0 %v1038_v0, %s1044_s13 }
  0x56   : > { %292 = vrot.lane.b32.xlu1 %v269_v2, %s1044_s13 }
  0x58   : > { %307 = vrot.lane.b32.xlu0 %v276_v3, %s1045_s14 }
  0x5a   : > { %305 = vrot.lane.b32.xlu1 %v269_v2, %s1045_s14 }
  0x5c   : > { %303 = vrot.lane.b32.xlu0 %v274_v4, %s1045_s14  ;;  %s827_s14 = sshll.u32 %s1108_s22, 8 }
  0x5e   : > { %290 = vrot.lane.b32.xlu1 %v267_v1, %s1044_s13  ;;  %s813_s13 = sshll.u32 %s243_s12, 4 }
  0x60   : > { %281 = vrot.lane.b32.xlu0 %v276_v3, %s1046_s15 }
  0x62   : > { %279 = vrot.lane.b32.xlu1 %v269_v2, %s1046_s15 }
  0x64   : > { %484 = vperm.xlu0 %910, %v264_v5  }
  0x66   : > { %277 = vrot.lane.b32.xlu1 %v274_v4, %s1046_s15  ;;  %s245_s15 = scalar_lea.vmem [#allocation9], %s813_s13 }
  0x67   : > { %s724_s16 = sshll.u32 %s245_s15, 4  ;;  %s725_s16 = int_to_ptr.vmem [resolvable:$true] %s724_s16 }
  0x68   : > { %590 = vrot.lane.b32.xlu0 %v1038_v0, %s1048_s23 }
  0x6a   : > { %577 = vrot.lane.b32.xlu1 %v1038_v0, %s1049_s25 }
  0x6c   : > { %564 = vrot.lane.b32.xlu0 %v1038_v0, %s1050_s26 }
  0x6e   : > { %551 = vrot.lane.b32.xlu1 %v1038_v0, %s1051_s30 }
  0x70   : > { %538 = vrot.lane.b32.xlu0 %v1038_v0, %s1052_s6 }
  0x72   : > { %525 = vrot.lane.b32.xlu1 %v1038_v0, %s1053_s7 }
  0x74   : > { %512 = vrot.lane.b32.xlu0 %v1038_v0, %s1054_s8 }
  0xa6   : > { %v373_v7 = vpop.permute.xlu0 %372 }
  0xaa   : > { %v347_v8 = vpop.permute.xlu0 %346 }
  0xac   : > { %v369_v9 = vpop.permute.xlu1 %368 }
  0xae   : > { %v371_v10 = vpop.permute.xlu0 %370 }
  0xaf   : > { %v375_v11 = vsel %vm374_vm0, %v369_v9, %v371_v10  ;;  %v376_v12 = vsel %vm374_vm0, %v371_v10, %v373_v7  ;;  %v263_v9 = vld [vmem:[#allocation4 + $0x8] sm:$0xff]  ;;  %v266_v10 = vld [vmem:[%s1270_s4] sm:$0xff]  ;;  %vm570_vm0 = vcmask 130048  }
  0xb0   : > { %379 = vst [vmem:[#allocation2 + $0x40] sm:$0xf] %v375_v11  ;;  %380 = vst [vmem:[#allocation2 + $0x38] sm:$0xf] %v376_v12  ;;  %v345_v13 = vpop.permute.xlu1 %344 }
  0xb1   : > { %v350_v14 = vsel %vm348_vm1, %v345_v13, %v347_v8 }
  0xb2   : > { %354 = vst [vmem:[#allocation2 + $0x20] sm:$0xf] %v350_v14  ;;  %v360_v15 = vpop.permute.xlu0 %359 }
  0xb4   : > { %v358_v16 = vpop.permute.xlu1 %357 }
  0xb5   : > { %v363_v17 = vsel %vm361_vm2, %v358_v16, %v360_v15 }
  0xb6   : > { %367 = vst [vmem:[#allocation2 + $0x20] sm:$0xf0] %v363_v17  ;;  %v356_v18 = vpop.permute.xlu0 %355 }
  0xb7   : > { %v362_v19 = vsel %vm361_vm2, %v356_v18, %v358_v16  ;;  %v390_v20 = vld [vmem:[#allocation2 + $0x38] sm:$0xf]  ;;  %v389_v21 = vld [vmem:[#allocation2 + $0x40] sm:$0xf]  ;;  %vm544_vm2 = vcmask 146432  }
  0xb8   : > { %366 = vst [vmem:[#allocation2 + $0x8] sm:$0xf0] %v362_v19  ;;  %v343_v22 = vpop.permute.xlu1 %342  ;;  %816 = vmatprep.subr.msk.mxu0 %vm398_vm3, %v390_v20 }
  0xb9   : > { %v349_v23 = vsel %vm348_vm1, %v343_v22, %v345_v13  ;;  %817 = vmatpush1.msk.msra.mxu0 %vm398_vm3, %v389_v21  ;;  %vm557_vm1 = vcmask 138240   ;;  %vm531_vm3 = vcmask 261120  }
  0xba   : > { %353 = vst [vmem:[#allocation2 + $0x8] sm:$0xf] %v349_v23  ;;  %v321_v24 = vpop.permute.xlu0 %320 }
  0xbc   : > { %v319_v25 = vpop.permute.xlu1 %318 }
  0xbd   : > { %v324_v26 = vsel %vm322_vm4, %v319_v25, %v321_v24  ;;  %v388_v27 = vld [vmem:[#allocation2 + $0x20] sm:$0xff] }
  0xbe   : > { %328 = vst [vmem:[#allocation2 + $0x28] sm:$0xf] %v324_v26  ;;  %429 = vmatprep.subr.mxu0 %v388_v27  ;;  %v334_v28 = vpop.permute.xlu0 %333 }
  0xc0   : > { %v332_v29 = vpop.permute.xlu1 %331 }
  0xc1   : > { %v337_v30 = vsel %vm335_vm5, %v332_v29, %v334_v28  ;;  %v387_v31 = vld [vmem:[#allocation2 + $0x8] sm:$0xff] }
  0xc2   : > { %341 = vst [vmem:[#allocation2 + $0x28] sm:$0xf0] %v337_v30  ;;  %430 = vmatpush1.msra.mxu0 %v387_v31  ;;  %v330_v32 = vpop.permute.xlu0 %329 }
  0xc3   : > { %v336_v33 = vsel %vm335_vm5, %v330_v32, %v332_v29  ;;  %vm505_vm5 = vcmask 277504  }
  0xc4   : > { %340 = vst [vmem:[#allocation2 + $0x48] sm:$0xf0] %v336_v33  ;;  %v317_v34 = vpop.permute.xlu1 %316 }
  0xc5   : > { %v323_v35 = vsel %vm322_vm4, %v317_v34, %v319_v25  ;;  %vm518_vm4 = vcmask 269312  }
  0xc6   : > { %327 = vst [vmem:[#allocation2 + $0x48] sm:$0xf] %v323_v35  ;;  %v295_v36 = vpop.permute.xlu0 %294 }
  0xc8   : > { %v293_v37 = vpop.permute.xlu1 %292 }
  0xc9   : > { %v298_v38 = vsel %vm296_vm6, %v293_v37, %v295_v36  ;;  %v386_v39 = vld [vmem:[#allocation2 + $0x28] sm:$0xff] }
  0xca   : > { %302 = vst [vmem:[#allocation2 + $0x10] sm:$0xf] %v298_v38  ;;  %431 = vmatprep.subr.mxu0 %v386_v39  ;;  %v308_v40 = vpop.permute.xlu0 %307 }
  0xcc   : > { %v306_v41 = vpop.permute.xlu1 %305 }
  0xcd   : > { %v311_v42 = vsel %vm309_vm7, %v306_v41, %v308_v40  ;;  %v385_v43 = vld [vmem:[#allocation2 + $0x48] sm:$0xff] }
  0xce   : > { %315 = vst [vmem:[#allocation2 + $0x10] sm:$0xf0] %v311_v42  ;;  %432 = vmatpush1.msra.mxu0 %v385_v43  ;;  %v304_v44 = vpop.permute.xlu0 %303 }
  0xcf   : > { %v310_v45 = vsel %vm309_vm7, %v304_v44, %v306_v41 }
  0xd0   : > { %314 = vst [vmem:[#allocation2 + $0x18] sm:$0xf0] %v310_v45  ;;  %v291_v46 = vpop.permute.xlu1 %290 }
  0xd1   : > { %v297_v47 = vsel %vm296_vm6, %v291_v46, %v293_v37  ;;  %vm628_vm6 = vcmask 588800  }
  0xd2   : > { %301 = vst [vmem:[#allocation2 + $0x18] sm:$0xf] %v297_v47  ;;  %v282_v48 = vpop.permute.xlu0 %281 }
  0xd4   : > { %v280_v49 = vpop.permute.xlu1 %279 }
  0xd5   : > { %v285_v50 = vsel %vm283_vm8, %v280_v49, %v282_v48  ;;  %v384_v51 = vld [vmem:[#allocation2 + $0x10] sm:$0xff] }
  0xd6   : > { %289 = vst [vmem:[#allocation2] sm:$0xf0] %v285_v50  ;;  %433 = vmatprep.subr.mxu0 %v384_v51 }
  0xd8   : > { %v278_v52 = vpop.permute.xlu1 %277 }
  0xd9   : > { %v284_v53 = vsel %vm283_vm8, %v278_v52, %v280_v49  ;;  %v383_v54 = vld [vmem:[#allocation2 + $0x18] sm:$0xff]  ;;  %v265_v49 = vld [vmem:[#allocation7] sm:$0xff] }
  0xda   : > { %288 = vst [vmem:[#allocation2 + $0x30] sm:$0xf0] %v284_v53  ;;  %434 = vmatpush1.msra.mxu0 %v383_v54 }
  0xdc   : > { %v578_v12 = vpop.permute.xlu1 %577 }
  0xdd   : > { %v382_v55 = vld [vmem:[#allocation2] sm:$0xff] }
  0xde   : > { %435 = vmatprep.subr.mxu0 %v382_v55 }
  0xdf   : > { %v485_v62 = vpop.permute.xlu0 %484 }
  0xe0   : > { %v552_v14 = vpop.permute.xlu1 %551 }
  0xe1   : > { %v381_v57 = vld [vmem:[#allocation2 + $0x30] sm:$0xff] }
  0xe2   : > { %436 = vmatpush1.msra.mxu0 %v381_v57 }
  0xe3   : > { %818 = vmatmul.mubr.msk.f32.vlgmr.msra.gmra.mxu0 %vm391_vm9, %v262_v56  ;;  %v591_v11 = vpop.permute.xlu0 %590 }
  0xe4   : > { %475 = vmatprep.mubr.f32.mxu0 %v1038_v0  ;;  %v526_v16 = vpop.permute.xlu1 %525 }
  0xe7   : > { %819 = vmatmul.mubr.msk.f32.gmra.mxu0 %vm391_vm9, %v263_v9  ;;  %v565_v13 = vpop.permute.xlu0 %564 }
  0xeb   : > { %v539_v15 = vpop.permute.xlu0 %538 }
  0xef   : > { %v513_v17 = vpop.permute.xlu0 %512 }
 0x1a3   : > { %v471_v1 = vpop.f32.mrf.mxu0 }
 0x1a4   : > { %v487_v2 = vadd.f32 %v485_v62, %v471_v1 }
 0x1a5   : > { %v473_v3 = vpop.f32.mrf.mxu0 }
 0x1a6   : > { %v489_v4 = vmax.f32 %v487_v2, 0.0  ;;  %v488_v5 = vadd.f32 %v485_v62, %v473_v3 }
 0x1a7   : > { %v477_v52 = vpop.f32.mrf.mxu0 }
 0x1a8   : > { %v495_v6 = vsel %vm256_vm12, %v489_v4, 0.0  ;;  %v490_v7 = vmax.f32 %v488_v5, 0.0 }
 0x1a9   : > { %566 = vrot.lane.b32.xlu0 %v495_v6, %s1050_s26  ;;  %592 = vrot.lane.b32.xlu1 %v495_v6, %s1048_s23  ;;  %v479_v58 = vpop.f32.mrf.mxu0 }
 0x1aa   : > { %828 = vmatprep.subr.msk.mxu1 %vm261_vm13, %v490_v7  ;;  %v496_v8 = vsel %vm261_vm13, %v490_v7, 0.0 }
 0x1ab   : > { %829 = vmatpush1.msk.msra.mxu1 %vm256_vm12, %v489_v4 }
 0x1ad   : > { %540 = vrot.lane.b32.xlu0 %v495_v6, %s1052_s6  ;;  %579 = vrot.lane.b32.xlu1 %v495_v6, %s1049_s25 }
 0x1b1   : > { %514 = vrot.lane.b32.xlu0 %v495_v6, %s1054_s8  ;;  %553 = vrot.lane.b32.xlu1 %v495_v6, %s1051_s30 }
 0x1b5   : > { %527 = vrot.lane.b32.xlu1 %v495_v6, %s1053_s7  ;;  %581 = vrot.lane.b32.xlu0 %v496_v8, %s1049_s25  ;;  %s722_s25 = scalar_lea.hbm %s1271_s5, %s827_s14 }
 0x1b9   : > { %501 = vrot.lane.b32.xlu1 %v495_v6, %s1055_s9  ;;  %555 = vrot.lane.b32.xlu0 %v496_v8, %s1051_s30  ;;  %s964_s30 = scalar_lea.vmem %s725_s16, 256 }
 0x1ba   : > { %p965_p10 = scmp.ne.s32.totalorder %s725_s16, %s964_s30 }
 0x1bc   : > { %p966_p12 = pnand %p965_p10, %p1125_p5 }
 0x1bd   : > { %529 = vrot.lane.b32.xlu0 %v496_v8, %s1053_s7  ;;  %594 = vrot.lane.b32.xlu1 %v496_v8, %s1048_s23 }
 0x1be   : > { %p967_p8 = pneg %p966_p12 }
 0x1c1   : > { %503 = vrot.lane.b32.xlu0 %v496_v8, %s1055_s9  ;;  %568 = vrot.lane.b32.xlu1 %v496_v8, %s1050_s26  ;;  %s710_s26 = scalar_lea.sflag [#allocation6], %s243_s12 }
 0x1c5   : > { %625 = vperm.xlu0 %910, %v266_v10   ;;  %542 = vrot.lane.b32.xlu1 %v496_v8, %s1052_s6  ;;  %s1056_s6 = smov [#allocation9]  }
 0x1c6   : > { %s968_s22 = sshll.u32 %s1056_s6, 4  ;;  %s969_s22 = int_to_ptr.vmem [resolvable:$false] %s968_s22 }
 0x1c7   : > { %s970_s7 = scalar_lea.vmem %s969_s22, 512  ;;  %p971_p11 = scmp.lt.s32.totalorder %s725_s16, %s969_s22 }
 0x1c8   : > { %p972_p0 = scmp.lt.s32.totalorder %s970_s7, %s964_s30 }
 0x1c9   : > { %516 = vrot.lane.b32.xlu1 %v496_v8, %s1054_s8 }
 0x1ca   : > { %p973_p1 = por %p972_p0, %p971_p11 }
 0x1cc   : > { %p974_p3 = pnand %p973_p1, %p967_p8 }
 0x1cd   : > { %499 = vrot.lane.b32.xlu1 %v1038_v0, %s1055_s9 }
 0x21b   : > { %v567_v18 = vpop.permute.xlu0 %566  ;;  %v593_v19 = vpop.permute.xlu1 %592 }
 0x21c   : > { %v597_v29 = vsel %vm596_vm14, %v591_v11, %v593_v19  ;;  %v571_v35 = vsel %vm570_vm0, %v565_v13, %v567_v18 }
 0x21f   : > { %v541_v20 = vpop.permute.xlu0 %540  ;;  %v580_v21 = vpop.permute.xlu1 %579 }
 0x220   : > { %v584_v32 = vsel %vm583_vm15, %v578_v12, %v580_v21  ;;  %v545_v40 = vsel %vm544_vm2, %v539_v15, %v541_v20 }
 0x223   : > { %v515_v22 = vpop.permute.xlu0 %514  ;;  %v554_v23 = vpop.permute.xlu1 %553 }
 0x224   : > { %v558_v38 = vsel %vm557_vm1, %v552_v14, %v554_v23  ;;  %v519_v46 = vsel %vm518_vm4, %v513_v17, %v515_v22 }
 0x227   : > { %v528_v24 = vpop.permute.xlu1 %527  ;;  %v582_v25 = vpop.permute.xlu0 %581 }
 0x228   : > { %v585_v30 = vsel %vm583_vm15, %v580_v21, %v582_v25  ;;  %v532_v44 = vsel %vm531_vm3, %v526_v16, %v528_v24 }
 0x22b   : > { %v502_v26 = vpop.permute.xlu1 %501  ;;  %v556_v27 = vpop.permute.xlu0 %555 }
 0x22c   : > { %v559_v36 = vsel %vm557_vm1, %v554_v23, %v556_v27 }
 0x22f   : > { %v595_v28 = vpop.permute.xlu1 %594  ;;  %v530_v34 = vpop.permute.xlu0 %529 }
 0x230   : > { %v598_v0 = vsel %vm596_vm14, %v593_v19, %v595_v28  ;;  %v533_v41 = vsel %vm531_vm3, %v528_v24, %v530_v34 }
 0x231   : > { %648 = vmatprep.subr.mxu1 %v598_v0 }
 0x232   : > { %649 = vmatpush1.msra.mxu1 %v597_v29 }
 0x233   : > { %650 = vmatprep.subr.mxu1 %v585_v30  ;;  %v569_v31 = vpop.permute.xlu1 %568  ;;  %v504_v42 = vpop.permute.xlu0 %503 }
 0x234   : > { %651 = vmatpush1.msra.mxu1 %v584_v32  ;;  %v572_v33 = vsel %vm570_vm0, %v567_v18, %v569_v31  ;;  %v507_v47 = vsel %vm505_vm5, %v502_v26, %v504_v42 }
 0x235   : > { %652 = vmatprep.subr.mxu1 %v572_v33 }
 0x236   : > { %653 = vmatpush1.msra.mxu1 %v571_v35 }
 0x237   : > { %654 = vmatprep.subr.mxu1 %v559_v36  ;;  %v543_v37 = vpop.permute.xlu1 %542 }
 0x238   : > { %655 = vmatpush1.msra.mxu1 %v558_v38  ;;  %v546_v39 = vsel %vm544_vm2, %v541_v20, %v543_v37 }
 0x239   : > { %656 = vmatprep.subr.mxu1 %v546_v39 }
 0x23a   : > { %657 = vmatpush1.msra.mxu1 %v545_v40 }
 0x23b   : > { %658 = vmatprep.subr.mxu1 %v533_v41  ;;  %v517_v43 = vpop.permute.xlu1 %516 }
 0x23c   : > { %659 = vmatpush1.msra.mxu1 %v532_v44  ;;  %v520_v45 = vsel %vm518_vm4, %v515_v22, %v517_v43 }
 0x23d   : > { %660 = vmatprep.subr.mxu1 %v520_v45 }
 0x23e   : > { %661 = vmatpush1.msra.mxu1 %v519_v46 }
 0x23f   : > { %662 = vmatprep.subr.mxu1 %v507_v47  ;;  %v500_v48 = vpop.permute.xlu1 %499 }
 0x240   : > { %v506_v50 = vsel %vm505_vm5, %v500_v48, %v502_v26  ;;  %v626_v51 = vpop.permute.xlu0 %625 }
 0x241   : > { %663 = vmatpush1.msra.mxu1 %v506_v50 }
 0x242   : > { %820 = vmatmul.mubr.msk.f32.vlgmr.msra.gmra.mxu1 %vm628_vm6, %v265_v49 }
 0x302   : > { %v698_v53 = vpop.f32.mrf.mxu1 }
 0x303   : > { %v699_v54 = vadd.f32 %v698_v53, %v626_v51 }
 0x304   : > { %v700_v55 = vpop.f32.mrf.mxu1 }
 0x305   : > { %v703_v56 = vadd.f32 %v699_v54, %v477_v52  ;;  %v701_v57 = vadd.f32 %v700_v55, %v626_v51 }
 0x307   : > { %v705_v59 = vmax.f32 %v703_v56, 0.0  ;;  %v704_v60 = vadd.f32 %v701_v57, %v479_v58 }
 0x309   : > { %707 = vst [vmem:[%s245_s15] sm:$0xff] %v705_v59  ;;  %v706_v61 = vmax.f32 %v704_v60, 0.0 }
 0x30b   : > { %708 = vst [vmem:[%s245_s15 + $0x8] sm:$0xff] %v706_v61 }
 0x30c   : > { %977 = shalt.err (!%p974_p3)
}
 0x30d   : > { %s978_s8 = scalar_lea.hbm %s722_s25, 256  ;;  %s982_s11 = scalar_lea.hbm %s1271_s5, 512 }
 0x30e   : > { %p979_p2 = scmp.ne.s32.totalorder %s722_s25, %s978_s8  ;;  %p983_p7 = scmp.lt.s32.totalorder %s722_s25, %s1271_s5 }
 0x30f   : > { %p984_p6 = scmp.lt.s32.totalorder %s982_s11, %s978_s8 }
 0x310   : > { %p980_p4 = pnand %p979_p2, %p1125_p5 }
 0x311   : > { %p985_p9 = por %p984_p6, %p983_p7 }
 0x312   : > { %p981_p13 = pneg %p980_p4 }
 0x314   : > { %p986_p10 = pnand %p985_p9, %p981_p13 }
 0x316   : > { %989 = shalt.err (!%p986_p10)
}
 0x317   : > { %838 = dma.vmem_to_hbm [thread:$0]  (%p1125_p5), %s725_s16, 256, %s722_s25, %s710_s26  }
 0x318 PF: > { %p855_p12 = scmp.ge.s32.totalorder %s1032_s21, 2  ;;  %s736_s14 = sand.u32 1, %s1020_s18  }
 0x319   : > { %p1281_p8 = scmp.ne.s32.totalorder %s1274_s29, 0  ;;  %s737_s15 = scalar_lea.sflag [#allocation6], %s736_s14 }
 0x31b   : > { %p848_p11 = pnand %p855_p12, %p1281_p8 }
 0x31d   : > { %p849_p0 = pneg %p848_p11 }
 0x31f   : > { %1015 = dma.done.wait (%p849_p0), %s737_s15, 256  }
 0x320   : > { %1017 = vsyncadd (%p849_p0), %s737_s15, 4294967040  ;;  %p17_p1 = scmp.ge.s32.totalorder %s1112_s24, 4   ;;  %s1282_s18 = smov %s1024_s19 }
 0x321   : > { %s1283_s19 = smov %s1028_s20  ;;  %s1284_s20 = smov %s1123_s27 }
 0x322   : > { %s1285_s21 = smov %s1112_s24  ;;  %19 = sbr.rel (!%p17_p1) target bundleno = 5 (0x5), region = 84 }
 0x327   :  { %742 = vsyncpa [#allocation5], 1 }
 0x328   :  { %744 = vsyncpa [#allocation5 + $0x1], 1 }
 0x329   :  { %745 = vsyncpa [#allocation8], 1 }
 0x32a   :  { %746 = vsyncpa [#allocation6], 1 }
 0x32b   :  { %748 = vsyncpa [#allocation6 + $0x1], 1 }

</bundles_post_ra>
